<compile_context>
chip_gen: v5e
topology: v5e:2x2
jax: 0.10.0
libtpu: 0.0.40
codegen_flags: <defaults>
</compile_context>

<pallas_src>
import functools

import jax
import jax.numpy as jnp
from jax.experimental import pallas as pl
from jax.experimental.pallas import tpu as pltpu


def _estimation_gate_kernel(tid_ref, diw_ref, hist_ref, nb_ref,
                            w1t_ref, w1d_ref, w2d_ref, b2_ref, o_ref, *, s_off):
    # Ref shapes (leading batch dim squeezed by the BlockSpec `None`):
    #   tid/diw : [S_in, n_tile, Et]     hist/o : [S_h, n_tile, D]
    #   nb      : [n_tile, H]            w1t/w1d: [Et, H]   w2d: [H, D]   b2: [1] (SMEM)
    s_h, n_tile, d = hist_ref.shape
    et = tid_ref.shape[-1]
    h_dim = nb_ref.shape[-1]
    rows = s_h * n_tile
    f32 = jnp.float32

    # Static slice of the last S_h timesteps (== PyTorch [:, -S_h:] on the gate, since
    # the gate has no temporal mixing).  Cast in VMEM; DMA stays in the input dtype.
    tid = tid_ref[s_off:s_off + s_h, :, :].astype(f32).reshape(rows, et)
    diw = diw_ref[s_off:s_off + s_h, :, :].astype(f32).reshape(rows, et)

    # fc1 time-dependent part for all rows of this (batch, node-tile) block.
    h = (jnp.dot(tid, w1t_ref[...], preferred_element_type=f32)
         + jnp.dot(diw, w1d_ref[...], preferred_element_type=f32))

    # fc1 node-dependent part: precomputed node bias, broadcast over timesteps.
    h = h.reshape(s_h, n_tile, h_dim) + nb_ref[...][None, :, :]
    h = jnp.maximum(h, 0.0).reshape(rows, h_dim)

    # fc2 on the MXU: every column of w2d is the fc2 weight vector, so each column of the
    # result is the (identical) gate logit -> lane-dense gate tile, no XLU reduce.
    logits = jnp.dot(h, w2d_ref[...], preferred_element_type=f32) + b2_ref[0]
    gate = jax.nn.sigmoid(logits).reshape(s_h, n_tile, d)

    o_ref[...] = (hist_ref[...].astype(f32) * gate).astype(o_ref.dtype)


def _pick_node_tile(n, max_tile=256):
    """Largest divisor of N that is <= max_tile, preferring sublane-aligned (x8) tiles."""
    divisors = [t for t in range(1, min(n, max_tile) + 1) if n % t == 0]
    aligned = [t for t in divisors if t % 8 == 0]
    return max(aligned) if aligned else max(divisors)


def estimation_gate_forward(node_embedding_u, node_embedding_d,
                            time_in_day_feat, day_in_week_feat,
                            history_data, params, *, node_tile=None):
    """node_emb_*: [N, En]; time feats: [B, S_in, N, Et]; history: [B, S_h, N, D]."""
    f32 = jnp.float32
    B, S_h, N, D = history_data.shape
    S_in = time_in_day_feat.shape[1]
    Et = time_in_day_feat.shape[-1]
    H = params["b1"].shape[0]
    assert S_in >= S_h

    # Tiny batch-independent precomputes (one-time XLA work, a few KB):
    #   node_bias[N, H] replaces the node-embedding expand + two per-program dots.
    node_bias = (node_embedding_u.astype(f32) @ params["w1_nu_t"].astype(f32)
                 + node_embedding_d.astype(f32) @ params["w1_nd_t"].astype(f32)
                 + params["b1"].astype(f32))
    #   W2D[H, D]: fc2 weight replicated across lanes so fc2 becomes an MXU dot.
    w2d = jnp.broadcast_to(params["w2_row"].astype(f32)[:, None], (H, D))
    b2 = params["b2"].reshape(1).astype(f32)
    w1t = params["w1_tid_t"].astype(f32)
    w1d = params["w1_diw_t"].astype(f32)

    n_tile = node_tile if node_tile is not None else _pick_node_tile(N)
    assert N % n_tile == 0
    grid = (B, N // n_tile)

    # Advisory cost estimate so XLA can schedule around this mem-bound kernel.
    rows_total = B * S_h * N
    cost = pl.CostEstimate(
        flops=int(2 * rows_total * (2 * Et * H + H * D)),
        transcendentals=int(rows_total * D),
        bytes_accessed=int(time_in_day_feat.nbytes + day_in_week_feat.nbytes
                           + 2 * history_data.nbytes
                           + node_bias.size * 4 + w1t.size * 4 + w1d.size * 4
                           + w2d.size * 4 + b2.size * 4),
    )

    kernel = functools.partial(_estimation_gate_kernel, s_off=S_in - S_h)
    out = pl.pallas_call(
        kernel,
        out_shape=jax.ShapeDtypeStruct((B, S_h, N, D), history_data.dtype),
        grid=grid,
        in_specs=[
            pl.BlockSpec((None, S_in, n_tile, Et), lambda b, j: (b, 0, j, 0)),  # tid
            pl.BlockSpec((None, S_in, n_tile, Et), lambda b, j: (b, 0, j, 0)),  # diw
            pl.BlockSpec((None, S_h, n_tile, D), lambda b, j: (b, 0, j, 0)),    # history
            pl.BlockSpec((n_tile, H), lambda b, j: (j, 0)),                     # node bias
            pl.BlockSpec((Et, H), lambda b, j: (0, 0)),                         # W1 (tid)
            pl.BlockSpec((Et, H), lambda b, j: (0, 0)),                         # W1 (diw)
            pl.BlockSpec((H, D), lambda b, j: (0, 0)),                          # W2 (lane-rep)
            pl.BlockSpec(memory_space=pltpu.MemorySpace.SMEM),                  # b2 scalar
        ],
        out_specs=pl.BlockSpec((None, S_h, n_tile, D), lambda b, j: (b, 0, j, 0)),
        compiler_params=pltpu.CompilerParams(
            dimension_semantics=("parallel", "parallel")),
        cost_estimate=cost,
    )(time_in_day_feat, day_in_week_feat, history_data,
      node_bias, w1t, w1d, w2d, b2)
    return out


if __name__ == "__main__":
    key = jax.random.PRNGKey(0)
    B, S_in, S_h, N = 2, 12, 10, 16            # batch, input_window, history seq, nodes
    NODE_EMB, TIME_EMB, HIDDEN, D = 32, 32, 32, 32
    ks = jax.random.split(key, 10)

    node_u = jax.random.normal(ks[0], (N, NODE_EMB), jnp.float32)
    node_d = jax.random.normal(ks[1], (N, NODE_EMB), jnp.float32)
    tid = jax.random.normal(ks[2], (B, S_in, N, TIME_EMB), jnp.float32)
    diw = jax.random.normal(ks[3], (B, S_in, N, TIME_EMB), jnp.float32)
    history = jax.random.normal(ks[4], (B, S_h, N, D), jnp.float32)

    in_dim = 2 * TIME_EMB + 2 * NODE_EMB       # concat order: tid, diw, node_u, node_d

    def winit(k, shape, fan_in):
        bound = float(fan_in) ** -0.5
        return jax.random.uniform(k, shape, jnp.float32, -bound, bound)

    w1_t = winit(ks[5], (in_dim, HIDDEN), in_dim)     # fc1 weight, stored transposed [in, H]
    b1 = winit(ks[6], (HIDDEN,), in_dim)
    w2_row = winit(ks[7], (HIDDEN,), HIDDEN)          # fc2 weight [1, H] -> row vector
    b2 = winit(ks[8], (1,), HIDDEN)

    params = {
        "w1_tid_t": w1_t[0:TIME_EMB],
        "w1_diw_t": w1_t[TIME_EMB:2 * TIME_EMB],
        "w1_nu_t": w1_t[2 * TIME_EMB:2 * TIME_EMB + NODE_EMB],
        "w1_nd_t": w1_t[2 * TIME_EMB + NODE_EMB:],
        "b1": b1,
        "w2_row": w2_row,
        "b2": b2,
    }

    fwd = jax.jit(estimation_gate_forward)
    out = fwd(node_u, node_d, tid, diw, history, params)
    jax.block_until_ready(out)

    # Pure-JAX reference mirroring the PyTorch forward exactly.
    feat = jnp.concatenate(
        [tid, diw,
         jnp.broadcast_to(node_u[None, None], (B, S_in, N, NODE_EMB)),
         jnp.broadcast_to(node_d[None, None], (B, S_in, N, NODE_EMB))], axis=-1)
    hidden = jnp.maximum(feat @ w1_t + b1, 0.0)
    gate = jax.nn.sigmoid(hidden @ w2_row[:, None] + b2)[:, -S_h:]
    ref = history * gate

    assert out.shape == (B, S_h, N, D), out.shape
    assert out.dtype == history.dtype, out.dtype
    assert bool(jnp.all(jnp.isfinite(out)))
    assert bool(jnp.allclose(out, ref, atol=1e-4, rtol=1e-4)), float(jnp.max(jnp.abs(out - ref)))
    print("KERNEL_OK")
</pallas_src>

<mosaic_0001>
module attributes {stable_mosaic.version = 11 : i64} {
  func.func @_estimation_gate_kernel(%arg0: i32, %arg1: i32, %arg2: memref<1x12x16x32xf32, #tpu.memory_space<vmem>>, %arg3: memref<1x12x16x32xf32, #tpu.memory_space<vmem>>, %arg4: memref<1x10x16x32xf32, #tpu.memory_space<vmem>>, %arg5: memref<16x32xf32, #tpu.memory_space<vmem>>, %arg6: memref<32x32xf32, #tpu.memory_space<vmem>>, %arg7: memref<32x32xf32, #tpu.memory_space<vmem>>, %arg8: memref<32x32xf32, #tpu.memory_space<vmem>>, %arg9: memref<1xf32, #tpu.memory_space<smem>>, %arg10: memref<1x10x16x32xf32, #tpu.memory_space<vmem>>) attributes {dimension_semantics = [#tpu.dimension_semantics<parallel>, #tpu.dimension_semantics<parallel>], iteration_bounds = array<i64: 2, 1>, scalar_prefetch = 0 : i64, scratch_operands = 0 : i64, tpu.core_type = #tpu.core_type<tc>, window_params = [{transform_indices = @transform_0, window_bounds = array<i64: 1, 12, 16, 32>}, {transform_indices = @transform_1, window_bounds = array<i64: 1, 12, 16, 32>}, {transform_indices = @transform_2, window_bounds = array<i64: 1, 10, 16, 32>}, {transform_indices = @transform_3, window_bounds = array<i64: 16, 32>}, {pipeline_mode = #tpu.pipeline_mode<synchronous>, transform_indices = @transform_4, window_bounds = array<i64: 32, 32>}, {pipeline_mode = #tpu.pipeline_mode<synchronous>, transform_indices = @transform_5, window_bounds = array<i64: 32, 32>}, {pipeline_mode = #tpu.pipeline_mode<synchronous>, transform_indices = @transform_6, window_bounds = array<i64: 32, 32>}, {transform_indices = @transform_7, window_bounds = array<i64: 1>}, {transform_indices = @transform_8, window_bounds = array<i64: 1, 10, 16, 32>}]} {
    %c0 = arith.constant 0 : index
    %c2 = arith.constant 2 : index
    %c0_0 = arith.constant 0 : index
    %c0_1 = arith.constant 0 : index
    %0 = vector.load %arg2[%c0, %c2, %c0_0, %c0_1] : memref<1x12x16x32xf32, #tpu.memory_space<vmem>>, vector<1x10x16x32xf32>
    %1 = vector.shape_cast %0 : vector<1x10x16x32xf32> to vector<10x16x32xf32>
    %2 = vector.shape_cast %1 : vector<10x16x32xf32> to vector<160x32xf32>
    %c0_2 = arith.constant 0 : index
    %c2_3 = arith.constant 2 : index
    %c0_4 = arith.constant 0 : index
    %c0_5 = arith.constant 0 : index
    %3 = vector.load %arg3[%c0_2, %c2_3, %c0_4, %c0_5] : memref<1x12x16x32xf32, #tpu.memory_space<vmem>>, vector<1x10x16x32xf32>
    %4 = vector.shape_cast %3 : vector<1x10x16x32xf32> to vector<10x16x32xf32>
    %5 = vector.shape_cast %4 : vector<10x16x32xf32> to vector<160x32xf32>
    %c0_6 = arith.constant 0 : index
    %c0_7 = arith.constant 0 : index
    %6 = vector.load %arg6[%c0_6, %c0_7] : memref<32x32xf32, #tpu.memory_space<vmem>>, vector<32x32xf32>
    %cst = arith.constant dense<0.000000e+00> : vector<160x32xf32>
    %7 = tpu.matmul %2, %6, %cst {dimension_numbers = #tpu.dot_dimension_numbers<[1], [0], [0], [1], [0, 0, 1, 1], [], []>} : vector<160x32xf32>, vector<32x32xf32>, vector<160x32xf32> -> vector<160x32xf32>
    %c0_8 = arith.constant 0 : index
    %c0_9 = arith.constant 0 : index
    %8 = vector.load %arg7[%c0_8, %c0_9] : memref<32x32xf32, #tpu.memory_space<vmem>>, vector<32x32xf32>
    %cst_10 = arith.constant dense<0.000000e+00> : vector<160x32xf32>
    %9 = tpu.matmul %5, %8, %cst_10 {dimension_numbers = #tpu.dot_dimension_numbers<[1], [0], [0], [1], [0, 0, 1, 1], [], []>} : vector<160x32xf32>, vector<32x32xf32>, vector<160x32xf32> -> vector<160x32xf32>
    %10 = arith.addf %7, %9 : vector<160x32xf32>
    %11 = vector.shape_cast %10 : vector<160x32xf32> to vector<10x16x32xf32>
    %c0_11 = arith.constant 0 : index
    %c0_12 = arith.constant 0 : index
    %12 = vector.load %arg5[%c0_11, %c0_12] : memref<16x32xf32, #tpu.memory_space<vmem>>, vector<16x32xf32>
    %13 = vector.shape_cast %12 : vector<16x32xf32> to vector<1x16x32xf32>
    %14 = vector.broadcast %13 : vector<1x16x32xf32> to vector<10x16x32xf32>
    %15 = arith.addf %11, %14 : vector<10x16x32xf32>
    %cst_13 = arith.constant 0.000000e+00 : f32
    %16 = vector.broadcast %cst_13 : f32 to vector<10x16x32xf32>
    %17 = arith.maximumf %15, %16 : vector<10x16x32xf32>
    %18 = vector.shape_cast %17 : vector<10x16x32xf32> to vector<160x32xf32>
    %c0_14 = arith.constant 0 : index
    %c0_15 = arith.constant 0 : index
    %19 = vector.load %arg8[%c0_14, %c0_15] : memref<32x32xf32, #tpu.memory_space<vmem>>, vector<32x32xf32>
    %cst_16 = arith.constant dense<0.000000e+00> : vector<160x32xf32>
    %20 = tpu.matmul %18, %19, %cst_16 {dimension_numbers = #tpu.dot_dimension_numbers<[1], [0], [0], [1], [0, 0, 1, 1], [], []>} : vector<160x32xf32>, vector<32x32xf32>, vector<160x32xf32> -> vector<160x32xf32>
    %c0_17 = arith.constant 0 : index
    %21 = memref.load %arg9[%c0_17] : memref<1xf32, #tpu.memory_space<smem>>
    %22 = vector.broadcast %21 : f32 to vector<160x32xf32>
    %23 = arith.addf %20, %22 : vector<160x32xf32>
    %24 = arith.negf %23 : vector<160x32xf32>
    %25 = math.exp %24 : vector<160x32xf32>
    %cst_18 = arith.constant 1.000000e+00 : f32
    %26 = vector.broadcast %cst_18 : f32 to vector<160x32xf32>
    %27 = arith.addf %26, %25 : vector<160x32xf32>
    %28 = arith.divf %26, %27 : vector<160x32xf32>
    %29 = vector.shape_cast %28 : vector<160x32xf32> to vector<10x16x32xf32>
    %c0_19 = arith.constant 0 : index
    %c0_20 = arith.constant 0 : index
    %c0_21 = arith.constant 0 : index
    %c0_22 = arith.constant 0 : index
    %30 = vector.load %arg4[%c0_19, %c0_20, %c0_21, %c0_22] : memref<1x10x16x32xf32, #tpu.memory_space<vmem>>, vector<1x10x16x32xf32>
    %31 = vector.shape_cast %30 : vector<1x10x16x32xf32> to vector<10x16x32xf32>
    %32 = arith.mulf %31, %29 : vector<10x16x32xf32>
    %c0_23 = arith.constant 0 : index
    %c0_24 = arith.constant 0 : index
    %c0_25 = arith.constant 0 : index
    %c0_26 = arith.constant 0 : index
    %33 = vector.load %arg10[%c0_23, %c0_24, %c0_25, %c0_26] : memref<1x10x16x32xf32, #tpu.memory_space<vmem>>, vector<1x10x16x32xf32>
    %34 = vector.shape_cast %33 : vector<1x10x16x32xf32> to vector<10x16x32xf32>
    %35 = vector.shape_cast %32 : vector<10x16x32xf32> to vector<1x10x16x32xf32>
    tpu.vector_store %arg10[%c0_23, %c0_24, %c0_25, %c0_26], %35 {strides = array<i32>} : memref<1x10x16x32xf32, #tpu.memory_space<vmem>>, vector<1x10x16x32xf32>,
    return
  }
  func.func @transform_0(%arg0: i32, %arg1: i32) -> (i32, i32, i32, i32) {
    %c0_i32 = arith.constant 0 : i32
    %c0_i32_0 = arith.constant 0 : i32
    %c0_i32_1 = arith.constant 0 : i32
    return %arg0, %c0_i32, %arg1, %c0_i32_0 : i32, i32, i32, i32
  }
  func.func @transform_1(%arg0: i32, %arg1: i32) -> (i32, i32, i32, i32) {
    %c0_i32 = arith.constant 0 : i32
    %c0_i32_0 = arith.constant 0 : i32
    %c0_i32_1 = arith.constant 0 : i32
    return %arg0, %c0_i32, %arg1, %c0_i32_0 : i32, i32, i32, i32
  }
  func.func @transform_2(%arg0: i32, %arg1: i32) -> (i32, i32, i32, i32) {
    %c0_i32 = arith.constant 0 : i32
    %c0_i32_0 = arith.constant 0 : i32
    %c0_i32_1 = arith.constant 0 : i32
    return %arg0, %c0_i32, %arg1, %c0_i32_0 : i32, i32, i32, i32
  }
  func.func @transform_3(%arg0: i32, %arg1: i32) -> (i32, i32) {
    %c0_i32 = arith.constant 0 : i32
    %c0_i32_0 = arith.constant 0 : i32
    return %arg1, %c0_i32 : i32, i32
  }
  func.func @transform_4(%arg0: i32, %arg1: i32) -> (i32, i32) {
    %c0_i32 = arith.constant 0 : i32
    %c0_i32_0 = arith.constant 0 : i32
    %c0_i32_1 = arith.constant 0 : i32
    return %c0_i32, %c0_i32_0 : i32, i32
  }
  func.func @transform_5(%arg0: i32, %arg1: i32) -> (i32, i32) {
    %c0_i32 = arith.constant 0 : i32
    %c0_i32_0 = arith.constant 0 : i32
    %c0_i32_1 = arith.constant 0 : i32
    return %c0_i32, %c0_i32_0 : i32, i32
  }
  func.func @transform_6(%arg0: i32, %arg1: i32) -> (i32, i32) {
    %c0_i32 = arith.constant 0 : i32
    %c0_i32_0 = arith.constant 0 : i32
    %c0_i32_1 = arith.constant 0 : i32
    return %c0_i32, %c0_i32_0 : i32, i32
  }
  func.func @transform_7(%arg0: i32, %arg1: i32) -> i32 {
    %c0_i32 = arith.constant 0 : i32
    %c0_i32_0 = arith.constant 0 : i32
    return %c0_i32 : i32
  }
  func.func @transform_8(%arg0: i32, %arg1: i32) -> (i32, i32, i32, i32) {
    %c0_i32 = arith.constant 0 : i32
    %c0_i32_0 = arith.constant 0 : i32
    %c0_i32_1 = arith.constant 0 : i32
    return %arg0, %c0_i32, %arg1, %c0_i32_0 : i32, i32, i32, i32
  }
}

</mosaic_0001>

<bundles_post_ra>
// kernel: estimation_gate_forward.1
= control target key start
LH: loop header
LB: loop body
LE: loop exit
PB: predicated region body
PF: predicated region fallthrough
CT: control target
= control target key end

     0   :  { %s2629_s0 = inlined_call_operand.hbm [shape: f32[2,12,16,32], index: 0, kind: input, shape index: {}]   ;;  %s2630_s1 = inlined_call_operand.hbm [shape: f32[2,12,16,32], index: 1, kind: input, shape index: {}]   ;;  %s2631_s2 = inlined_call_operand.hbm [shape: f32[2,10,16,32], index: 2, kind: input, shape index: {}]   ;;  %s2632_s3 = inlined_call_operand.vmem [shape: f32[16,32], index: 3, kind: input, shape index: {}]   ;;  %s2633_s4 = inlined_call_operand.vmem [shape: f32[32,32], index: 4, kind: input, shape index: {}]   ;;  %s2634_s5 = inlined_call_operand.vmem [shape: f32[32,32], index: 5, kind: input, shape index: {}]   ;;  %s2635_s6 = inlined_call_operand.vmem [shape: f32[32,32], index: 6, kind: input, shape index: {}]   ;;  %s2636_s7 = inlined_call_operand.<no memory space> [shape: f32[1], index: 7, kind: input, shape index: {}]   ;;  %s2637_s8 = inlined_call_operand.hbm [shape: f32[2,10,16,32], index: 8, kind: output, shape index: {}]  }
   0x1   :  { %2649 = sst [smem:[#allocation21_spill]] %s2630_s1 }
   0x2   :  { %2650 = sst [smem:[#allocation22_spill]] %s2632_s3 }
   0x3   :  { %2651 = sst [smem:[#allocation23_spill]] %s2635_s6 }
   0x4   :  { %2652 = sst [smem:[#allocation24_spill]] %s2637_s8 }
   0x5   :  { %13 = sst [smem:[#allocation2]] %s2636_s7 }
   0x6   :  { %14 = vsyncpa [#allocation4], 0 }
   0x7   :  { %16 = vsyncpa [#allocation4 + $0x1], 0 }
   0x8   :  { %17 = vsyncpa [#allocation7], 0 }
   0x9   :  { %19 = vsyncpa [#allocation7 + $0x1], 0 }
   0xa   :  { %20 = vsyncpa [#allocation5], 0 }
   0xb   :  { %22 = vsyncpa [#allocation5 + $0x1], 0  ;;  %s2118_s29 = smov 0   ;;  %s2120_s30 = smov 0  }
   0xc   :  { %s2122_s9 = smov 0   ;;  %s2124_s10 = smov 0  }
   0xd   :  { %s2126_s11 = smov 0   ;;  %s2128_s12 = smov 0  }
   0xe LB: > { %2653 = sst [smem:[#allocation13_spill]] %s2044_s29  ;;  %s2149_s7 = sadd.s32 4294967295, %s2064_s12   ;;  %s2064_s12 = sphi %s2128_s12, %s28_s12   ;;  %s2060_s11 = sphi %s2126_s11, %s2687_s11   ;;  %s2056_s10 = sphi %s2124_s10, %s2686_s10   ;;  %s2052_s9 = sphi %s2122_s9, %s2682_s9   ;;  %s2048_s30 = sphi %s2120_s30, %s2685_s30   ;;  %s2044_s29 = sphi %s2118_s29, %s2684_s29  }
   0xf   : > { %2654 = sst [smem:[#allocation14_spill]] %s2052_s9  ;;  %s1580_s13 = sadd.s32 4294967294, %s2064_s12  }
  0x10   : > { %2655 = sst [smem:[#allocation15_spill]] %s2056_s10  ;;  %s40_s14 = sadd.s32 1, %s2060_s11 }
  0x11   : > { %2656 = sst [smem:[#allocation16_spill]] %s2064_s12  ;;  %s49_s15 = sadd.s32 1, %s2052_s9 }
  0x12   : > { %p42_p0 = scmp.ge.s32.totalorder %s40_s14, 2  ;;  %p56_p1 = scmp.ne.s32.totalorder %s2052_s9, %s2048_s30 }
  0x13   : > { %p57_p2 = scmp.eq.s32.totalorder %s2064_s12, 0  ;;  %p62_p3 = scmp.ne.s32.totalorder %s2048_s30, %s2044_s29 }
  0x14   : > { %s2689_s14 = smov (%p42_p0, %s40_s14), 0  ;;  %p63_p5 = scmp.eq.s32.totalorder %s2149_s7, 0 }
  0x15   : > { %2657 = sst [smem:[#allocation17_spill]] %s2689_s14  ;;  %p2161_p4 = por %p57_p2, %p56_p1 }
  0x16   : > { %s44_s17 = ssub.s32 %s2060_s11, %s2689_s14  ;;  %p254_p6 = scmp.eq.s32.totalorder %s2149_s7, 1 }
  0x17   : > { %p47_p7 = scmp.eq.s32.totalorder %s44_s17, 0  ;;  %p2169_p8 = por %p63_p5, %p62_p3 }
  0x18   : > { %p2173_p9 = por %p254_p6, %p56_p1  ;;  %p260_p10 = scmp.eq.s32.totalorder %s1580_s13, 1 }
  0x19   : > { %s2178_s20 = scalar_select %p47_p7, %s2052_s9, %s49_s15  }
  0x1a   : > { %s2660_s19 = scalar_select %p2173_p9, 1, 0 }
  0x1b   : > { %2662 = sst [smem:[#allocation19_spill]] %s2178_s20  ;;  %p2180_p11 = por %p260_p10, %p62_p3 }
  0x1c   : > { %2661 = sst [smem:[#allocation18_spill]] %s2660_s19  ;;  %p1583_p12 = scmp.ge.s32.totalorder %s2064_s12, 2 }
  0x1d   : > { %s2663_s21 = scalar_select %p2180_p11, 1, 0 }
  0x1e   : > { %p1754_p13 = scmp.lt.s32.totalorder %s2064_s12, 2  ;;  %s2187_s22 = sand.u32 1, %s2052_s9  }
  0x1f   : > { %2664 = sst [smem:[#allocation20_spill]] %s2663_s21  ;;  %s1723_s23 = smul.u32 192, %s2187_s22 }
  0x20   : > { %s1724_s24 = smul.u32 192, %s2060_s11  ;;  %p2193_p0 = pnand %p1754_p13, %p2161_p4 }
  0x21   : > { %s325_s26 = sand.u32 1, %s2064_s12   ;;  %s2666_s1 = sld [smem:[#allocation21_spill]] }
  0x22   : > { %s329_s17 = scalar_lea.vmem [#allocation6], %s1723_s23  ;;  %s326_s20 = scalar_lea.sflag [#allocation7], %s325_s26 }
  0x23   : > { %s339_s14 = sshll.u32 %s329_s17, 4  ;;  %s2066_s16 = smov 128   ;;  %s340_s14 = int_to_ptr.vmem [resolvable:$true] %s339_s14 }
  0x24   : > { %s2067_s9 = smov 8   ;;  %p1587_p1 = scmp.ge.s32.totalorder %s2064_s12, 1 }
  0x25   : > { %p371_p2 = scmp.lt.s32.totalorder %s2064_s12, 3  ;;  %s302_s26 = scalar_lea.sflag [#allocation4], %s2187_s22 }
  0x27   : > { %s336_s13 = scalar_lea.hbm %s2666_s1, %s1724_s24  ;;  %p2205_p3 = pnand %p1587_p1, %p371_p2 }
  0x28   : > { %s337_s15 = sshll.u32 %s336_s13, 4  ;;  %s312_s13 = scalar_lea.hbm %s2629_s0, %s1724_s24  ;;  %s338_s15 = int_to_ptr.hbm [resolvable:$true] %s337_s15 }
  0x29   : > { %1746 = dma.hbm_to_vmem [thread:$0]  (!%p2193_p0), %s338_s15, 3072, %s340_s14, %s326_s20, %s2066_s16, %s2066_s16, %s2067_s9  }
  0x2a   : > { %s313_s17 = sshll.u32 %s312_s13, 4  ;;  %s305_s1 = scalar_lea.vmem [#allocation3], %s1723_s23  ;;  %s314_s17 = int_to_ptr.hbm [resolvable:$true] %s313_s17 }
  0x2b   : > { %s315_s29 = sshll.u32 %s305_s1, 4  ;;  %s1727_s14 = smul.u32 160, %s2187_s22  ;;  %s316_s29 = int_to_ptr.vmem [resolvable:$true] %s315_s29 }
  0x2c   : > { %1743 = dma.hbm_to_vmem [thread:$0]  (!%p2193_p0), %s314_s17, 3072, %s316_s29, %s302_s26, %s2066_s16, %s2066_s16, %s2067_s9  }
  0x2d   : > { %s1728_s15 = smul.u32 160, %s2060_s11  ;;  %s353_s10 = scalar_lea.vmem [#allocation8], %s1727_s14 }
  0x2e   : > { %s363_s3 = sshll.u32 %s353_s10, 4  ;;  %375 = sbr.rel (%p2205_p3) target bundleno = 476 (0x1dc), region = 52  ;;  %s364_s3 = int_to_ptr.vmem [resolvable:$true] %s363_s3 }
  0x2f   : > { %s360_s8 = scalar_lea.hbm %s2631_s2, %s1728_s15  ;;  %s2225_s1 = sand.u32 (!%p2205_p3), 1, %s2048_s30  }
  0x30   : > { %s361_s6 = sshll.u32 %s360_s8, 4  ;;  %s1729_s29 = smul.u32 (!%p2205_p3), 192, %s2225_s1  ;;  %s362_s6 = int_to_ptr.hbm [resolvable:$true] %s361_s6 }
  0x31   : > { %1749 = dma.hbm_to_vmem [thread:$0]  (!%p2193_p0), %s362_s6, 2560, %s364_s3, %s326_s20, %s2066_s16, %s2066_s16, %s2067_s9  }
  0x32   : > { %s378_s22 = scalar_lea.sflag (!%p2205_p3), [#allocation4], %s2225_s1  ;;  %s2229_s12 = scalar_lea.vmem (!%p2205_p3), [#allocation3], %s1729_s29 }
  0x33   : > { %2031 = dma.done.wait (%p2169_p8), %s378_s22, 3072  }
  0x34   : > { %2033 = vsyncadd (%p2169_p8), %s378_s22, 4294964224  ;;  %s387_s3 = sand.u32 1, %s2149_s7   ;;  %s2236_s8 = scalar_lea.vmem [#allocation6], %s1729_s29 }
  0x35   : > { %s388_s6 = scalar_lea.sflag [#allocation7], %s387_s3 }
  0x36   : > { %2035 = dma.done.wait (%p2169_p8), %s388_s6, 5632  }
  0x37   : > { %2037 = vsyncadd (%p2169_p8), %s388_s6, 4294961664  ;;  %v509_v0 = vld [vmem:[%s2634_s5 + $0x18] sm:$0xff]  ;;  %v508_v2 = vld [vmem:[%s2634_s5 + $0x10] sm:$0xff]  ;;  %vm510_vm0 = vcmask 261120   ;;  %s2668_s29 = sld [smem:[#allocation23_spill]]  ;;  %s1730_s18 = smul.u32 160, %s2225_s1 }
  0x38   : > { %v505_v1 = vld [vmem:[%s2633_s4 + $0x18] sm:$0xff]  ;;  %583 = vmatpush.msra.mxu0 %v509_v0  ;;  %1711 = vmatpush.msra.mxu3 %v509_v0  ;;  %v504_v3 = vld [vmem:[%s2633_s4 + $0x10] sm:$0xff]  ;;  %v507_v4 = vld [vmem:[%s2634_s5 + $0x8] sm:$0xff]  ;;  %s2670_s7 = sld [smem:[#allocation22_spill]]  ;;  %s1411_s6 = scalar_lea.sflag [#allocation5], %s2225_s1 }
  0x39   : > { %720 = vmatpush.msra.mxu1 %v505_v1  ;;  %v503_v5 = vld [vmem:[%s2633_s4 + $0x8] sm:$0xff]  ;;  %v506_v6 = vld [vmem:[%s2634_s5] sm:$0xff]  ;;  %v1623_v9 = vld [vmem:[%s2236_s8 + $0x98] sm:$0xff]  ;;  %s831_s24 = sld [smem:[#allocation2]]  ;;  %s2417_s25 = scalar_lea.vmem [#allocation8], %s1730_s18 }
  0x3a   : > { %584 = vmatpush.msra.mxu0 %v508_v2  ;;  %1712 = vmatpush.msra.mxu3 %v508_v2  ;;  %v502_v7 = vld [vmem:[%s2633_s4] sm:$0xff]  ;;  %v1609_v11 = vld [vmem:[%s2236_s8 + $0x28] sm:$0xff]  ;;  %v1610_v14 = vld [vmem:[%s2236_s8 + $0x30] sm:$0xff]  ;;  %s2422_s16 = scalar_lea.vmem [#allocation9], %s1730_s18  ;;  %s2675_s27 = sld [smem:[#allocation15_spill]] }
  0x3b   : > { %721 = vmatpush.msra.mxu1 %v504_v3  ;;  %v1608_v8 = vld [vmem:[%s2236_s8 + $0x20] sm:$0xff]  ;;  %v1589_v13 = vld [vmem:[%s2229_s12 + $0x28] sm:$0xff]  ;;  %v1590_v16 = vld [vmem:[%s2229_s12 + $0x30] sm:$0xff]  ;;  %s2676_s26 = sld [smem:[#allocation24_spill]]  ;;  %s1425_s15 = sshll.u32 %s2422_s16, 4  ;;  %s1426_s15 = int_to_ptr.vmem [resolvable:$true] %s1425_s15 }
  0x3c   : > { %585 = vmatpush.msra.mxu0 %v507_v4  ;;  %1713 = vmatpush.msra.mxu3 %v507_v4  ;;  %v1588_v10 = vld [vmem:[%s2229_s12 + $0x20] sm:$0xff]  ;;  %v1625_v15 = vld [vmem:[%s2236_s8 + $0xa8] sm:$0xff]  ;;  %v1611_v17 = vld [vmem:[%s2236_s8 + $0x38] sm:$0xff] }
  0x3d   : > { %722 = vmatpush.msra.mxu1 %v503_v5  ;;  %v1624_v12 = vld [vmem:[%s2236_s8 + $0xa0] sm:$0xff]  ;;  %v1626_v18 = vld [vmem:[%s2236_s8 + $0xb0] sm:$0xff]  ;;  %v1591_v19 = vld [vmem:[%s2229_s12 + $0x38] sm:$0xff]  ;;  %s2669_s22 = smov %s2668_s29 }
  0x3e   : > { %586 = vmatpush.msra.mxu0 %v506_v6  ;;  %1714 = vmatpush.msra.mxu3 %v506_v6  ;;  %v1612_v20 = vld [vmem:[%s2236_s8 + $0x40] sm:$0xff]  ;;  %v1627_v21 = vld [vmem:[%s2236_s8 + $0xb8] sm:$0xff]  ;;  %v1613_v23 = vld [vmem:[%s2236_s8 + $0x48] sm:$0xff] }
  0x3f   : > { %723 = vmatpush.msra.mxu1 %v502_v7  ;;  %1628 = vmatmul.msk.f32.vlgmr.msra.gmra.mxu0 %vm510_vm0, %v1608_v8  ;;  %v1592_v22 = vld [vmem:[%s2229_s12 + $0x40] sm:$0xff]  ;;  %v1593_v24 = vld [vmem:[%s2229_s12 + $0x48] sm:$0xff]  ;;  %v1603_v25 = vld [vmem:[%s2229_s12 + $0x98] sm:$0xff] }
  0x40   : > { %1643 = vmatmul.msk.f32.vlgmr.msra.gmra.mxu3 %vm510_vm0, %v1623_v9  ;;  %1648 = vmatmul.msk.f32.vlgmr.msra.gmra.mxu1 %vm510_vm0, %v1588_v10  ;;  %v1614_v26 = vld [vmem:[%s2236_s8 + $0x50] sm:$0xff]  ;;  %v1604_v28 = vld [vmem:[%s2229_s12 + $0xa0] sm:$0xff]  ;;  %v1615_v29 = vld [vmem:[%s2236_s8 + $0x58] sm:$0xff]  ;;  %s1731_s28 = smul.u32 160, %s2675_s27 }
  0x41   : > { %1715 = vmatpush.msrb.mxu3 %v505_v1  ;;  %v1594_v27 = vld [vmem:[%s2229_s12 + $0x50] sm:$0xff]  ;;  %v1595_v30 = vld [vmem:[%s2229_s12 + $0x58] sm:$0xff]  ;;  %v1605_v31 = vld [vmem:[%s2229_s12 + $0xa8] sm:$0xff]  ;;  %s1998_s21 = scalar_lea.hbm %s2676_s26, 320 }
  0x42   : > { %v1616_v32 = vld [vmem:[%s2236_s8 + $0x60] sm:$0xff]  ;;  %v1606_v34 = vld [vmem:[%s2229_s12 + $0xb0] sm:$0xff]  ;;  %v1617_v35 = vld [vmem:[%s2236_s8 + $0x68] sm:$0xff]  ;;  %s1424_s14 = scalar_lea.hbm %s2676_s26, %s1731_s28 }
  0x43   : > { %1716 = vmatpush.msrb.mxu3 %v504_v3  ;;  %v1596_v33 = vld [vmem:[%s2229_s12 + $0x60] sm:$0xff]  ;;  %v1597_v36 = vld [vmem:[%s2229_s12 + $0x68] sm:$0xff]  ;;  %v1607_v37 = vld [vmem:[%s2229_s12 + $0xb8] sm:$0xff]  ;;  %s1427_s3 = sshll.u32 %s1424_s14, 4  ;;  %s1428_s3 = int_to_ptr.hbm [resolvable:$true] %s1427_s3 }
  0x44   : > { %v1618_v38 = vld [vmem:[%s2236_s8 + $0x70] sm:$0xff]  ;;  %v1619_v40 = vld [vmem:[%s2236_s8 + $0x78] sm:$0xff]  ;;  %v1620_v42 = vld [vmem:[%s2236_s8 + $0x80] sm:$0xff]  ;;  %s1992_s9 = sshra.s32 %s1428_s3, 4  ;;  %s1993_s9 = int_to_ptr.hbm [resolvable:$true] %s1992_s9 }
  0x45   : > { %1717 = vmatpush.msrb.mxu3 %v503_v5  ;;  %v1598_v39 = vld [vmem:[%s2229_s12 + $0x70] sm:$0xff]  ;;  %v1599_v41 = vld [vmem:[%s2229_s12 + $0x78] sm:$0xff]  ;;  %v1600_v44 = vld [vmem:[%s2229_s12 + $0x80] sm:$0xff]  ;;  %s1994_s10 = scalar_lea.hbm %s1993_s9, 160  ;;  %p1999_p7 = scmp.lt.s32.totalorder %s1993_s9, %s2676_s26 }
  0x46   : > { %v830_v43 = vld [vmem:[%s2668_s29 + $0x18] sm:$0xff]  ;;  %v829_v45 = vld [vmem:[%s2669_s22 + $0x10] sm:$0xff]  ;;  %v828_v46 = vld [vmem:[%s2669_s22 + $0x8] sm:$0xff]  ;;  %p1995_p4 = scmp.ne.s32.totalorder %s1993_s9, %s1994_s10  ;;  %p2000_p8 = scmp.lt.s32.totalorder %s1998_s21, %s1994_s10 }
  0x47   : > { %1629 = vmatmul.msk.f32.gmra.mxu0 %vm510_vm0, %v1609_v11  ;;  %1718 = vmatpush.msrb.mxu3 %v502_v7  ;;  %v827_v47 = vld [vmem:[%s2669_s22] sm:$0xff]  ;;  %v1621_v48 = vld [vmem:[%s2236_s8 + $0x88] sm:$0xff]  ;;  %v1622_v50 = vld [vmem:[%s2236_s8 + $0x90] sm:$0xff] }
  0x48   : > { %1644 = vmatmul.msk.f32.gmra.mxu3 %vm510_vm0, %v1624_v12  ;;  %1649 = vmatmul.msk.f32.gmra.mxu1 %vm510_vm0, %v1589_v13  ;;  %v1601_v49 = vld [vmem:[%s2229_s12 + $0x88] sm:$0xff]  ;;  %v1602_v51 = vld [vmem:[%s2229_s12 + $0x90] sm:$0xff]  ;;  %v2361_v54 = vld [vmem:[%s2670_s7] sm:$0xff]  ;;  %p1996_p5 = pnand %p1995_p4, %p2173_p9  ;;  %p2001_p10 = por %p2000_p8, %p1999_p7 }
  0x49   : > { %905 = vmatpush.msra.mxu2 %v830_v43  ;;  %1719 = vmatpush.msra.mxu3 %v830_v43  ;;  %v2368_v61 = vld [vmem:[%s2670_s7 + $0x8] sm:$0xff] }
  0x4a   : > { %p1997_p6 = pneg %p1996_p5 }
  0x4b   : > { %906 = vmatpush.msra.mxu2 %v829_v45  ;;  %1720 = vmatpush.msra.mxu3 %v829_v45 }
  0x4c   : > { %p2002_p13 = pnand %p2001_p10, %p1997_p6 }
  0x4d   : > { %907 = vmatpush.msra.mxu2 %v828_v46  ;;  %1721 = vmatpush.msra.mxu3 %v828_v46 }
  0x4f   : > { %1630 = vmatmul.msk.f32.gmra.mxu0 %vm510_vm0, %v1610_v14  ;;  %908 = vmatpush.msra.mxu2 %v827_v47 }
  0x50   : > { %1645 = vmatmul.msk.f32.gmra.mxu3 %vm510_vm0, %v1625_v15  ;;  %1650 = vmatmul.msk.f32.gmra.mxu1 %vm510_vm0, %v1590_v16 }
  0x51   : > { %1722 = vmatpush.msra.mxu3 %v827_v47 }
  0x57   : > { %1631 = vmatmul.msk.f32.gmra.mxu0 %vm510_vm0, %v1611_v17 }
  0x58   : > { %1646 = vmatmul.msk.f32.gmra.mxu3 %vm510_vm0, %v1626_v18  ;;  %1651 = vmatmul.msk.f32.gmra.mxu1 %vm510_vm0, %v1591_v19 }
  0x5f   : > { %1632 = vmatmul.msk.f32.gmra.mxu0 %vm510_vm0, %v1612_v20 }
  0x60   : > { %1647 = vmatmul.msk.f32.gmra.mxu3 %vm510_vm0, %v1627_v21  ;;  %1652 = vmatmul.msk.f32.gmra.mxu1 %vm510_vm0, %v1592_v22 }
  0x67   : > { %1633 = vmatmul.msk.f32.gmra.mxu0 %vm510_vm0, %v1613_v23 }
  0x68   : > { %1653 = vmatmul.msk.f32.gmra.mxu1 %vm510_vm0, %v1593_v24  ;;  %1663 = vmatmul.msk.f32.vlgmr.msrb.gmra.mxu3 %vm510_vm0, %v1603_v25 }
  0x6f   : > { %1634 = vmatmul.msk.f32.gmra.mxu0 %vm510_vm0, %v1614_v26 }
  0x70   : > { %1654 = vmatmul.msk.f32.gmra.mxu1 %vm510_vm0, %v1594_v27  ;;  %1664 = vmatmul.msk.f32.gmra.mxu3 %vm510_vm0, %v1604_v28 }
  0x77   : > { %1635 = vmatmul.msk.f32.gmra.mxu0 %vm510_vm0, %v1615_v29 }
  0x78   : > { %1655 = vmatmul.msk.f32.gmra.mxu1 %vm510_vm0, %v1595_v30  ;;  %1665 = vmatmul.msk.f32.gmra.mxu3 %vm510_vm0, %v1605_v31 }
  0x7f   : > { %1636 = vmatmul.msk.f32.gmra.mxu0 %vm510_vm0, %v1616_v32 }
  0x80   : > { %1656 = vmatmul.msk.f32.gmra.mxu1 %vm510_vm0, %v1596_v33  ;;  %1666 = vmatmul.msk.f32.gmra.mxu3 %vm510_vm0, %v1606_v34 }
  0x87   : > { %1637 = vmatmul.msk.f32.gmra.mxu0 %vm510_vm0, %v1617_v35 }
  0x88   : > { %1657 = vmatmul.msk.f32.gmra.mxu1 %vm510_vm0, %v1597_v36  ;;  %1667 = vmatmul.msk.f32.gmra.mxu3 %vm510_vm0, %v1607_v37 }
  0x8f   : > { %1638 = vmatmul.msk.f32.gmra.mxu0 %vm510_vm0, %v1618_v38 }
  0x90   : > { %1658 = vmatmul.msk.f32.gmra.mxu1 %vm510_vm0, %v1598_v39 }
  0x97   : > { %1639 = vmatmul.msk.f32.gmra.mxu0 %vm510_vm0, %v1619_v40 }
  0x98   : > { %1659 = vmatmul.msk.f32.gmra.mxu1 %vm510_vm0, %v1599_v41 }
  0x9f   : > { %1640 = vmatmul.msk.f32.gmra.mxu0 %vm510_vm0, %v1620_v42 }
  0xa0   : > { %1660 = vmatmul.msk.f32.gmra.mxu1 %vm510_vm0, %v1600_v44 }
  0xa7   : > { %1641 = vmatmul.msk.f32.gmra.mxu0 %vm510_vm0, %v1621_v48 }
  0xa8   : > { %1661 = vmatmul.msk.f32.gmra.mxu1 %vm510_vm0, %v1601_v49 }
  0xaf   : > { %1642 = vmatmul.msk.f32.gmra.mxu0 %vm510_vm0, %v1622_v50 }
  0xb0   : > { %1662 = vmatmul.msk.f32.gmra.mxu1 %vm510_vm0, %v1602_v51 }
  0xbc   : > { %v588_v52 = vpop.f32.mrf.mxu0 }
  0xbd   : > { %v725_v53 = vpop.f32.mrf.mxu1 }
  0xbe   : > { %v726_v55 = vadd.f32 %v725_v53, %v588_v52 }
  0xc0   : > { %v787_v56 = vadd.f32 %v2361_v54, %v726_v55 }
  0xc2   : > { %v807_v57 = vmax.f32 %v787_v56, 0.0 }
  0xc3   : > { %v633_v58 = vpop.f32.mrf.mxu3 }
  0xc4   : > { %1668 = vmatmul.msk.f32.vlgmr.msra.gmra.mxu2 %vm510_vm0, %v807_v57  ;;  %v591_v59 = vpop.f32.mrf.mxu0 }
  0xc5   : > { %v728_v60 = vpop.f32.mrf.mxu1 }
  0xc6   : > { %v729_v62 = vadd.f32 %v728_v60, %v591_v59 }
  0xc8   : > { %v788_v63 = vadd.f32 %v2368_v61, %v729_v62 }
  0xca   : > { %v808_v0 = vmax.f32 %v788_v63, 0.0 }
  0xcb   : > { %v636_v1 = vpop.f32.mrf.mxu3 }
  0xcc   : > { %1669 = vmatmul.msk.f32.gmra.mxu2 %vm510_vm0, %v808_v0  ;;  %v594_v2 = vpop.f32.mrf.mxu0 }
  0xcd   : > { %v731_v3 = vpop.f32.mrf.mxu1 }
  0xce   : > { %v732_v4 = vadd.f32 %v731_v3, %v594_v2 }
  0xd0   : > { %v789_v5 = vadd.f32 %v2361_v54, %v732_v4 }
  0xd2   : > { %v809_v6 = vmax.f32 %v789_v5, 0.0 }
  0xd3   : > { %v639_v7 = vpop.f32.mrf.mxu3 }
  0xd4   : > { %1670 = vmatmul.msk.f32.gmra.mxu2 %vm510_vm0, %v809_v6  ;;  %v597_v8 = vpop.f32.mrf.mxu0 }
  0xd5   : > { %v734_v9 = vpop.f32.mrf.mxu1 }
  0xd6   : > { %v735_v10 = vadd.f32 %v734_v9, %v597_v8 }
  0xd8   : > { %v790_v11 = vadd.f32 %v2368_v61, %v735_v10 }
  0xda   : > { %v810_v12 = vmax.f32 %v790_v11, 0.0 }
  0xdb   : > { %v642_v13 = vpop.f32.mrf.mxu3 }
  0xdc   : > { %1671 = vmatmul.msk.f32.gmra.mxu2 %vm510_vm0, %v810_v12  ;;  %v600_v14 = vpop.f32.mrf.mxu0 }
  0xdd   : > { %v737_v15 = vpop.f32.mrf.mxu1 }
  0xde   : > { %v738_v16 = vadd.f32 %v737_v15, %v600_v14 }
  0xe0   : > { %v791_v17 = vadd.f32 %v2361_v54, %v738_v16 }
  0xe2   : > { %v811_v18 = vmax.f32 %v791_v17, 0.0 }
  0xe3   : > { %v645_v19 = vpop.f32.mrf.mxu3 }
  0xe4   : > { %1672 = vmatmul.msk.f32.gmra.mxu2 %vm510_vm0, %v811_v18  ;;  %v603_v20 = vpop.f32.mrf.mxu0 }
  0xe5   : > { %v740_v21 = vpop.f32.mrf.mxu1 }
  0xe6   : > { %v741_v22 = vadd.f32 %v740_v21, %v603_v20 }
  0xe8   : > { %v792_v23 = vadd.f32 %v2368_v61, %v741_v22 }
  0xea   : > { %v812_v24 = vmax.f32 %v792_v23, 0.0 }
  0xeb   : > { %v770_v25 = vpop.f32.mrf.mxu3 }
  0xec   : > { %v771_v26 = vadd.f32 %v770_v25, %v633_v58  ;;  %1673 = vmatmul.msk.f32.gmra.mxu2 %vm510_vm0, %v812_v24  ;;  %v606_v27 = vpop.f32.mrf.mxu0 }
  0xed   : > { %v743_v28 = vpop.f32.mrf.mxu1 }
  0xee   : > { %v802_v29 = vadd.f32 %v2368_v61, %v771_v26  ;;  %v744_v30 = vadd.f32 %v743_v28, %v606_v27  ;;  %v2408_v28 = vstv %s831_s24 }
  0xf0   : > { %v822_v31 = vmax.f32 %v802_v29, 0.0  ;;  %v793_v32 = vadd.f32 %v2361_v54, %v744_v30 }
  0xf2   : > { %v813_v33 = vmax.f32 %v793_v32, 0.0  ;;  %1683 = vmatmul.msk.f32.vlgmr.msra.gmra.mxu3 %vm510_vm0, %v822_v31 }
  0xf3   : > { %v773_v34 = vpop.f32.mrf.mxu3 }
  0xf4   : > { %v774_v35 = vadd.f32 %v773_v34, %v636_v1  ;;  %1674 = vmatmul.msk.f32.gmra.mxu2 %vm510_vm0, %v813_v33  ;;  %v609_v36 = vpop.f32.mrf.mxu0 }
  0xf5   : > { %v746_v37 = vpop.f32.mrf.mxu1 }
  0xf6   : > { %v803_v38 = vadd.f32 %v2361_v54, %v774_v35  ;;  %v747_v39 = vadd.f32 %v746_v37, %v609_v36 }
  0xf8   : > { %v823_v40 = vmax.f32 %v803_v38, 0.0  ;;  %v794_v41 = vadd.f32 %v2368_v61, %v747_v39 }
  0xfa   : > { %v814_v42 = vmax.f32 %v794_v41, 0.0  ;;  %1684 = vmatmul.msk.f32.gmra.mxu3 %vm510_vm0, %v823_v40 }
  0xfb   : > { %v776_v43 = vpop.f32.mrf.mxu3 }
  0xfc   : > { %v777_v44 = vadd.f32 %v776_v43, %v639_v7  ;;  %1675 = vmatmul.msk.f32.gmra.mxu2 %vm510_vm0, %v814_v42  ;;  %v612_v45 = vpop.f32.mrf.mxu0 }
  0xfd   : > { %v749_v46 = vpop.f32.mrf.mxu1 }
  0xfe   : > { %v804_v47 = vadd.f32 %v2368_v61, %v777_v44  ;;  %v750_v48 = vadd.f32 %v749_v46, %v612_v45 }
 0x100   : > { %v824_v49 = vmax.f32 %v804_v47, 0.0  ;;  %v795_v50 = vadd.f32 %v2361_v54, %v750_v48 }
 0x102   : > { %v815_v51 = vmax.f32 %v795_v50, 0.0  ;;  %1685 = vmatmul.msk.f32.gmra.mxu3 %vm510_vm0, %v824_v49 }
 0x103   : > { %v779_v52 = vpop.f32.mrf.mxu3 }
 0x104   : > { %v780_v53 = vadd.f32 %v779_v52, %v642_v13  ;;  %1676 = vmatmul.msk.f32.gmra.mxu2 %vm510_vm0, %v815_v51  ;;  %v615_v55 = vpop.f32.mrf.mxu0 }
 0x105   : > { %v752_v56 = vpop.f32.mrf.mxu1 }
 0x106   : > { %v805_v57 = vadd.f32 %v2361_v54, %v780_v53  ;;  %v753_v58 = vadd.f32 %v752_v56, %v615_v55  ;;  %v1350_v53 = vld [vmem:[%s2417_s25] sm:$0xff] }
 0x108   : > { %v825_v59 = vmax.f32 %v805_v57, 0.0  ;;  %v796_v60 = vadd.f32 %v2368_v61, %v753_v58 }
 0x10a   : > { %v816_v62 = vmax.f32 %v796_v60, 0.0  ;;  %1686 = vmatmul.msk.f32.gmra.mxu3 %vm510_vm0, %v825_v59 }
 0x10b   : > { %v782_v63 = vpop.f32.mrf.mxu3 }
 0x10c   : > { %v783_v0 = vadd.f32 %v782_v63, %v645_v19  ;;  %1677 = vmatmul.msk.f32.gmra.mxu2 %vm510_vm0, %v816_v62  ;;  %v618_v1 = vpop.f32.mrf.mxu0 }
 0x10d   : > { %v755_v2 = vpop.f32.mrf.mxu1 }
 0x10e   : > { %v806_v3 = vadd.f32 %v2368_v61, %v783_v0  ;;  %v756_v4 = vadd.f32 %v755_v2, %v618_v1 }
 0x110   : > { %v826_v5 = vmax.f32 %v806_v3, 0.0  ;;  %v797_v6 = vadd.f32 %v2361_v54, %v756_v4 }
 0x112   : > { %v817_v7 = vmax.f32 %v797_v6, 0.0  ;;  %1687 = vmatmul.msk.f32.gmra.mxu3 %vm510_vm0, %v826_v5 }
 0x114   : > { %1678 = vmatmul.msk.f32.gmra.mxu2 %vm510_vm0, %v817_v7  ;;  %v621_v8 = vpop.f32.mrf.mxu0 }
 0x115   : > { %v758_v9 = vpop.f32.mrf.mxu1 }
 0x116   : > { %v759_v10 = vadd.f32 %v758_v9, %v621_v8  ;;  %v1351_v8 = vld [vmem:[%s2417_s25 + $0x8] sm:$0xff] }
 0x118   : > { %v798_v11 = vadd.f32 %v2368_v61, %v759_v10 }
 0x11a   : > { %v818_v12 = vmax.f32 %v798_v11, 0.0 }
 0x11c   : > { %1679 = vmatmul.msk.f32.gmra.mxu2 %vm510_vm0, %v818_v12  ;;  %v624_v13 = vpop.f32.mrf.mxu0 }
 0x11d   : > { %v761_v14 = vpop.f32.mrf.mxu1 }
 0x11e   : > { %v762_v15 = vadd.f32 %v761_v14, %v624_v13 }
 0x120   : > { %v799_v16 = vadd.f32 %v2361_v54, %v762_v15 }
 0x122   : > { %v819_v17 = vmax.f32 %v799_v16, 0.0 }
 0x124   : > { %1680 = vmatmul.msk.f32.gmra.mxu2 %vm510_vm0, %v819_v17  ;;  %v627_v18 = vpop.f32.mrf.mxu0 }
 0x125   : > { %v764_v19 = vpop.f32.mrf.mxu1 }
 0x126   : > { %v765_v20 = vadd.f32 %v764_v19, %v627_v18 }
 0x128   : > { %v800_v21 = vadd.f32 %v2368_v61, %v765_v20 }
 0x12a   : > { %v820_v22 = vmax.f32 %v800_v21, 0.0 }
 0x12c   : > { %1681 = vmatmul.msk.f32.gmra.mxu2 %vm510_vm0, %v820_v22  ;;  %v630_v23 = vpop.f32.mrf.mxu0 }
 0x12d   : > { %v767_v24 = vpop.f32.mrf.mxu1 }
 0x12e   : > { %v768_v25 = vadd.f32 %v767_v24, %v630_v23 }
 0x130   : > { %v801_v26 = vadd.f32 %v2361_v54, %v768_v25  ;;  %v1352_v25 = vld [vmem:[%s2417_s25 + $0x10] sm:$0xff] }
 0x132   : > { %v821_v27 = vmax.f32 %v801_v26, 0.0 }
 0x134   : > { %1682 = vmatmul.msk.f32.gmra.mxu2 %vm510_vm0, %v821_v27 }
 0x147   : > { %v910_v29 = vpop.f32.mrf.mxu2 }
 0x148   : > { %v911_v30 = vadd.f32 %v910_v29, %v2408_v28 }
 0x14a   : > { %v1688_v31 = vmul.f32 -1.442695, %v911_v30 }
 0x14c   : > { %1808 = vpow2.f32 %v1688_v31 }
 0x14f   : > { %v913_v61 = vpop.f32.mrf.mxu2 }
 0x150   : > { %v914_v32 = vadd.f32 %v913_v61, %v2408_v28 }
 0x152   : > { %v1809_v33 = vpop.eup %1808  ;;  %v1689_v34 = vmul.f32 -1.442695, %v914_v32 }
 0x153   : > { %v1030_v35 = vadd.f32 1.0, %v1809_v33 }
 0x154   : > { %1810 = vpow2.f32 %v1689_v34 }
 0x155   : > { %1812 = vrcp.f32 %v1030_v35  ;;  %v1061_v43 = vand.u32 2147483648, %v1030_v35  ;;  %v1059_v46 = vand.u32 2147483647, %v1030_v35  ;;  %vm1055_vm2 = vweird.f32 %v1030_v35 }
 0x157   : > { %v916_v54 = vpop.f32.mrf.mxu2  ;;  %v1062_v52 = vor.u32 1.1754944e-38, %v1061_v43  ;;  %vm1060_vm4 = vcmp.eq.f32.partialorder %v1059_v46, 8.507059e+37 }
 0x158   : > { %v917_v36 = vadd.f32 %v916_v54, %v2408_v28 }
 0x15a   : > { %v1811_v37 = vpop.eup %1810  ;;  %v1690_v38 = vmul.f32 -1.442695, %v917_v36 }
 0x15b   : > { %v1813_v39 = vpop.eup %1812  ;;  %v1031_v40 = vadd.f32 1.0, %v1811_v37 }
 0x15c   : > { %v1051_v41 = vmul.f32 %v1813_v39, %v1030_v35  ;;  %1814 = vpow2.f32 %v1690_v38  ;;  %vm1056_vm1 = vweird.f32 %v1813_v39 }
 0x15d   : > { %1816 = vrcp.f32 %v1031_v40  ;;  %vm1057_vm3 = vmor %vm1055_vm2, %vm1056_vm1  ;;  %v1076_v62 = vand.u32 2147483648, %v1031_v40  ;;  %v1074_v1 = vand.u32 2147483647, %v1031_v40  ;;  %vm1070_vm6 = vweird.f32 %v1031_v40 }
 0x15e   : > { %v1052_v42 = vsub.f32 1.0, %v1051_v41 }
 0x15f   : > { %v919_v44 = vpop.f32.mrf.mxu2  ;;  %v1077_v7 = vor.u32 1.1754944e-38, %v1076_v62  ;;  %vm1075_vm8 = vcmp.eq.f32.partialorder %v1074_v1, 8.507059e+37 }
 0x160   : > { %v1053_v45 = vmul.f32 %v1813_v39, %v1052_v42  ;;  %v920_v47 = vadd.f32 %v919_v44, %v2408_v28  ;;  %v1353_v44 = vld [vmem:[%s2417_s25 + $0x18] sm:$0xff] }
 0x162   : > { %v1815_v48 = vpop.eup %1814  ;;  %v1054_v49 = vadd.f32 %v1813_v39, %v1053_v45  ;;  %v1691_v50 = vmul.f32 -1.442695, %v920_v47 }
 0x163   : > { %v1817_v51 = vpop.eup %1816  ;;  %v1032_v55 = vadd.f32 1.0, %v1815_v48 }
 0x164   : > { %v1058_v56 = vsel %vm1057_vm3, %v1813_v39, %v1054_v49  ;;  %v1066_v57 = vmul.f32 %v1817_v51, %v1031_v40  ;;  %1818 = vpow2.f32 %v1691_v50  ;;  %vm1071_vm5 = vweird.f32 %v1817_v51 }
 0x165   : > { %v1063_v58 = vsel %vm1060_vm4, %v1062_v52, %v1058_v56  ;;  %1820 = vrcp.f32 %v1032_v55  ;;  %vm1072_vm7 = vmor %vm1070_vm6, %vm1071_vm5  ;;  %v1091_v15 = vand.u32 2147483648, %v1032_v55  ;;  %v1089_v18 = vand.u32 2147483647, %v1032_v55 }
 0x166   : > { %v1370_v59 = vmul.f32 %v1350_v53, %v1063_v58  ;;  %v1067_v60 = vsub.f32 1.0, %v1066_v57  ;;  %vm1085_vm10 = vweird.f32 %v1032_v55 }
 0x167   : > { %v922_v63 = vpop.f32.mrf.mxu2  ;;  %v1092_v24 = vor.u32 1.1754944e-38, %v1091_v15  ;;  %vm1090_vm12 = vcmp.eq.f32.partialorder %v1089_v18, 8.507059e+37 }
 0x168   : > { %1390 = vst.msk [vmem:[%s2422_s16] sm:$0xff] %vm510_vm0, %v1370_v59  ;;  %v1068_v0 = vmul.f32 %v1817_v51, %v1067_v60  ;;  %v923_v2 = vadd.f32 %v922_v63, %v2408_v28 }
 0x16a   : > { %v1819_v3 = vpop.eup %1818  ;;  %v1069_v4 = vadd.f32 %v1817_v51, %v1068_v0  ;;  %v1692_v5 = vmul.f32 -1.442695, %v923_v2 }
 0x16b   : > { %v1821_v6 = vpop.eup %1820  ;;  %v1033_v9 = vadd.f32 1.0, %v1819_v3 }
 0x16c   : > { %v1073_v10 = vsel %vm1072_vm7, %v1817_v51, %v1069_v4  ;;  %v1081_v11 = vmul.f32 %v1821_v6, %v1032_v55  ;;  %1822 = vpow2.f32 %v1692_v5  ;;  %vm1086_vm9 = vweird.f32 %v1821_v6  ;;  %v1354_v4 = vld [vmem:[%s2417_s25 + $0x20] sm:$0xff] }
 0x16d   : > { %v1078_v12 = vsel %vm1075_vm8, %v1077_v7, %v1073_v10  ;;  %1824 = vrcp.f32 %v1033_v9  ;;  %vm1087_vm11 = vmor %vm1085_vm10, %vm1086_vm9  ;;  %v1104_v34 = vand.u32 2147483647, %v1033_v9  ;;  %v1106_v35 = vand.u32 2147483648, %v1033_v9 }
 0x16e   : > { %v1371_v13 = vmul.f32 %v1351_v8, %v1078_v12  ;;  %v1082_v14 = vsub.f32 1.0, %v1081_v11  ;;  %vm1100_vm14 = vweird.f32 %v1033_v9 }
 0x16f   : > { %v925_v16 = vpop.f32.mrf.mxu2  ;;  %v1107_v43 = vor.u32 1.1754944e-38, %v1106_v35  ;;  %vm1105_vm1 = vcmp.eq.f32.partialorder %v1104_v34, 8.507059e+37 }
 0x170   : > { %1391 = vst.msk [vmem:[%s2422_s16 + $0x8] sm:$0xff] %vm510_vm0, %v1371_v13  ;;  %v1083_v17 = vmul.f32 %v1821_v6, %v1082_v14  ;;  %v926_v19 = vadd.f32 %v925_v16, %v2408_v28 }
 0x172   : > { %v1823_v20 = vpop.eup %1822  ;;  %v1084_v21 = vadd.f32 %v1821_v6, %v1083_v17  ;;  %v1693_v22 = vmul.f32 -1.442695, %v926_v19 }
 0x173   : > { %v1825_v23 = vpop.eup %1824  ;;  %v1034_v26 = vadd.f32 1.0, %v1823_v20 }
 0x174   : > { %v1088_v27 = vsel %vm1087_vm11, %v1821_v6, %v1084_v21  ;;  %v1096_v29 = vmul.f32 %v1825_v23, %v1033_v9  ;;  %1826 = vpow2.f32 %v1693_v22  ;;  %vm1101_vm13 = vweird.f32 %v1825_v23 }
 0x175   : > { %v1093_v30 = vsel %vm1090_vm12, %v1092_v24, %v1088_v27  ;;  %1828 = vrcp.f32 %v1034_v26  ;;  %v955_v31 = vpop.f32.mrf.mxu3  ;;  %vm1102_vm15 = vmor %vm1100_vm14, %vm1101_vm13  ;;  %v1119_v53 = vand.u32 2147483647, %v1034_v26  ;;  %v1121_v55 = vand.u32 2147483648, %v1034_v26 }
 0x176   : > { %v1372_v61 = vmul.f32 %v1352_v25, %v1093_v30  ;;  %v1097_v32 = vsub.f32 1.0, %v1096_v29  ;;  %v956_v33 = vadd.f32 %v955_v31, %v2408_v28  ;;  %vm1115_vm3 = vweird.f32 %v1034_v26 }
 0x177   : > { %v928_v54 = vpop.f32.mrf.mxu2  ;;  %v1122_v3 = vor.u32 1.1754944e-38, %v1121_v55  ;;  %vm1120_vm5 = vcmp.eq.f32.partialorder %v1119_v53, 8.507059e+37 }
 0x178   : > { %1392 = vst.msk [vmem:[%s2422_s16 + $0x10] sm:$0xff] %vm510_vm0, %v1372_v61  ;;  %v1098_v36 = vmul.f32 %v1825_v23, %v1097_v32  ;;  %v1703_v37 = vmul.f32 -1.442695, %v956_v33  ;;  %v929_v38 = vadd.f32 %v928_v54, %v2408_v28 }
 0x17a   : > { %v1827_v39 = vpop.eup %1826  ;;  %v1099_v40 = vadd.f32 %v1825_v23, %v1098_v36  ;;  %1830 = vpow2.f32 %v1703_v37  ;;  %v1694_v41 = vmul.f32 -1.442695, %v929_v38 }
 0x17b   : > { %v1829_v42 = vpop.eup %1828  ;;  %v1035_v45 = vadd.f32 1.0, %v1827_v39 }
 0x17c   : > { %v1103_v46 = vsel %vm1102_vm15, %v1825_v23, %v1099_v40  ;;  %v1111_v47 = vmul.f32 %v1829_v42, %v1034_v26  ;;  %1832 = vpow2.f32 %v1694_v41  ;;  %vm1116_vm2 = vweird.f32 %v1829_v42  ;;  %v1355_v26 = vld [vmem:[%s2417_s25 + $0x28] sm:$0xff] }
 0x17d   : > { %v1108_v48 = vsel %vm1105_vm1, %v1107_v43, %v1103_v46  ;;  %1834 = vrcp.f32 %v1035_v45  ;;  %v958_v49 = vpop.f32.mrf.mxu3  ;;  %vm1117_vm4 = vmor %vm1115_vm3, %vm1116_vm2  ;;  %v1134_v9 = vand.u32 2147483647, %v1035_v45  ;;  %v1136_v13 = vand.u32 2147483648, %v1035_v45 }
 0x17e   : > { %v1373_v50 = vmul.f32 %v1353_v44, %v1108_v48  ;;  %v1112_v51 = vsub.f32 1.0, %v1111_v47  ;;  %v959_v52 = vadd.f32 %v958_v49, %v2408_v28  ;;  %vm1130_vm7 = vweird.f32 %v1035_v45  ;;  %v1365_v48 = vld [vmem:[%s2417_s25 + $0x78] sm:$0xff] }
 0x17f   : > { %v931_v56 = vpop.f32.mrf.mxu2  ;;  %vm1135_vm8 = vcmp.eq.f32.partialorder %v1134_v9, 8.507059e+37  ;;  %v1137_v23 = vor.u32 1.1754944e-38, %v1136_v13 }
 0x180   : > { %v1831_v57 = vpop.eup %1830  ;;  %1393 = vst.msk [vmem:[%s2422_s16 + $0x18] sm:$0xff] %vm510_vm0, %v1373_v50  ;;  %v1113_v58 = vmul.f32 %v1829_v42, %v1112_v51  ;;  %v1704_v59 = vmul.f32 -1.442695, %v959_v52  ;;  %v932_v60 = vadd.f32 %v931_v56, %v2408_v28 }
 0x181   : > { %v2441_v62 = vadd.f32 1.0, %v1831_v57 }
 0x182   : > { %v1833_v63 = vpop.eup %1832  ;;  %v1114_v0 = vadd.f32 %v1829_v42, %v1113_v58  ;;  %1836 = vpow2.f32 %v1704_v59  ;;  %v1695_v1 = vmul.f32 -1.442695, %v932_v60 }
 0x183   : > { %v1835_v2 = vpop.eup %1834  ;;  %1838 = vrcp.f32 %v2441_v62  ;;  %v2445_v7 = vadd.f32 1.0, %v1833_v63  ;;  %v1284_v27 = vand.u32 2147483647, %v2441_v62  ;;  %v1286_v29 = vand.u32 2147483648, %v2441_v62 }
 0x184   : > { %v1118_v5 = vsel %vm1117_vm4, %v1829_v42, %v1114_v0  ;;  %v1126_v6 = vmul.f32 %v1835_v2, %v1035_v45  ;;  %1840 = vpow2.f32 %v1695_v1  ;;  %vm1131_vm6 = vweird.f32 %v1835_v2  ;;  %v1356_v0 = vld [vmem:[%s2417_s25 + $0x30] sm:$0xff] }
 0x185   : > { %v1123_v8 = vsel %vm1120_vm5, %v1122_v3, %v1118_v5  ;;  %v961_v10 = vpop.f32.mrf.mxu3  ;;  %1842 = vrcp.f32 %v2445_v7  ;;  %vm1132_vm9 = vmor %vm1130_vm7, %vm1131_vm6  ;;  %v1149_v54 = vand.u32 2147483647, %v2445_v7  ;;  %v1151_v36 = vand.u32 2147483648, %v2445_v7 }
 0x186   : > { %v1374_v11 = vmul.f32 %v1354_v4, %v1123_v8  ;;  %v1127_v12 = vsub.f32 1.0, %v1126_v6  ;;  %v962_v14 = vadd.f32 %v961_v10, %v2408_v28  ;;  %vm1280_vm11 = vweird.f32 %v2441_v62 }
 0x187   : > { %v934_v15 = vpop.f32.mrf.mxu2  ;;  %vm2466_vm12 = vcmp.eq.f32.partialorder %v1284_v27, 8.507059e+37  ;;  %v1287_v41 = vor.u32 1.1754944e-38, %v1286_v29  ;;  %vm1145_vm14 = vweird.f32 %v2445_v7  ;;  %vm2476_vm1 = vcmp.eq.f32.partialorder %v1149_v54, 8.507059e+37 }
 0x188   : > { %v1837_v16 = vpop.eup %1836  ;;  %1394 = vst.msk [vmem:[%s2422_s16 + $0x20] sm:$0xff] %vm510_vm0, %v1374_v11  ;;  %v1128_v17 = vmul.f32 %v1835_v2, %v1127_v12  ;;  %v935_v18 = vadd.f32 %v934_v15, %v2408_v28  ;;  %v1705_v21 = vmul.f32 -1.442695, %v962_v14  ;;  %v1152_v53 = vor.u32 1.1754944e-38, %v1151_v36 }
 0x189   : > { %v1839_v19 = vpop.eup %1838  ;;  %v2452_v20 = vadd.f32 1.0, %v1837_v16 }
 0x18a   : > { %v1129_v22 = vadd.f32 %v1835_v2, %v1128_v17  ;;  %v1276_v24 = vmul.f32 %v1839_v19, %v2441_v62  ;;  %v1841_v25 = vpop.eup %1840  ;;  %v1696_v30 = vmul.f32 -1.442695, %v935_v18  ;;  %vm1281_vm10 = vweird.f32 %v1839_v19  ;;  %v1366_v18 = vld [vmem:[%s2417_s25 + $0x80] sm:$0xff] }
 0x18b   : > { %1844 = vrcp.f32 %v2452_v20  ;;  %v1843_v31 = vpop.eup %1842  ;;  %v2459_v33 = vadd.f32 1.0, %v1841_v25  ;;  %vm1282_vm13 = vmor %vm1280_vm11, %vm1281_vm10  ;;  %v1301_v59 = vand.u32 2147483648, %v2452_v20  ;;  %vm1295_vm3 = vweird.f32 %v2452_v20 }
 0x18c   : > { %v1133_v61 = vsel %vm1132_vm9, %v1835_v2, %v1129_v22  ;;  %v1277_v32 = vsub.f32 1.0, %v1276_v24  ;;  %1846 = vpow2.f32 %v1705_v21  ;;  %v1141_v35 = vmul.f32 %v1843_v31, %v2445_v7 }
 0x18d   : > { %v1138_v34 = vsel %vm1135_vm8, %v1137_v23, %v1133_v61  ;;  %v964_v37 = vpop.f32.mrf.mxu3  ;;  %1848 = vrcp.f32 %v2459_v33  ;;  %vm1146_vm15 = vweird.f32 %v1843_v31  ;;  %v1299_v9 = vand.u32 2147483647, %v2452_v20  ;;  %v1357_v61 = vld [vmem:[%s2417_s25 + $0x38] sm:$0xff] }
 0x18e   : > { %v1375_v38 = vmul.f32 %v1355_v26, %v1138_v34  ;;  %v1278_v39 = vmul.f32 %v1839_v19, %v1277_v32  ;;  %v1142_v42 = vsub.f32 1.0, %v1141_v35  ;;  %1850 = vpow2.f32 %v1696_v30  ;;  %vm1147_vm2 = vmor %vm1145_vm14, %vm1146_vm15 }
 0x18f   : > { %v937_v43 = vpop.f32.mrf.mxu2  ;;  %v965_v45 = vadd.f32 %v964_v37, %v2408_v28  ;;  %v1302_v11 = vor.u32 1.1754944e-38, %v1301_v59  ;;  %v1166_v16 = vand.u32 2147483648, %v2459_v33  ;;  %v1164_v21 = vand.u32 2147483647, %v2459_v33 }
 0x190   : > { %1395 = vst.msk [vmem:[%s2422_s16 + $0x28] sm:$0xff] %vm510_vm0, %v1375_v38  ;;  %v1279_v44 = vadd.f32 %v1839_v19, %v1278_v39  ;;  %v938_v46 = vadd.f32 %v937_v43, %v2408_v28  ;;  %v1143_v49 = vmul.f32 %v1843_v31, %v1142_v42  ;;  %vm1300_vm7 = vcmp.eq.f32.partialorder %v1299_v9, 8.507059e+37 }
 0x191   : > { %v1845_v47 = vpop.eup %1844  ;;  %v1706_v56 = vmul.f32 -1.442695, %v965_v45  ;;  %vm1160_vm8 = vweird.f32 %v2459_v33  ;;  %vm1165_vm10 = vcmp.eq.f32.partialorder %v1164_v21, 8.507059e+37 }
 0x192   : > { %v1847_v51 = vpop.eup %1846  ;;  %v1283_v52 = vsel %vm1282_vm13, %v1839_v19, %v1279_v44  ;;  %v1291_v55 = vmul.f32 %v1845_v47, %v2452_v20  ;;  %v1144_v58 = vadd.f32 %v1843_v31, %v1143_v49  ;;  %v1697_v2 = vmul.f32 -1.442695, %v938_v46  ;;  %v1367_v49 = vld [vmem:[%s2417_s25 + $0x88] sm:$0xff] }
 0x193   : > { %v1288_v57 = vsel %vm2466_vm12, %v1287_v41, %v1283_v52  ;;  %v2484_v60 = vadd.f32 1.0, %v1847_v51  ;;  %v1849_v62 = vpop.eup %1848  ;;  %1852 = vpow2.f32 %v1706_v56  ;;  %vm1296_vm4 = vweird.f32 %v1845_v47 }
 0x194   : > { %v1385_v63 = vmul.f32 %v1365_v48, %v1288_v57  ;;  %v1292_v1 = vsub.f32 1.0, %v1291_v55  ;;  %v1148_v3 = vsel %vm1147_vm2, %v1843_v31, %v1144_v58  ;;  %v1156_v4 = vmul.f32 %v1849_v62, %v2459_v33  ;;  %v1851_v6 = vpop.eup %1850  ;;  %vm1297_vm5 = vmor %vm1295_vm3, %vm1296_vm4 }
 0x195   : > { %1854 = vrcp.f32 %v2484_v60  ;;  %v967_v5 = vpop.f32.mrf.mxu3  ;;  %v1153_v7 = vsel %vm2476_vm1, %v1152_v53, %v1148_v3  ;;  %v2495_v13 = vadd.f32 1.0, %v1851_v6  ;;  %vm1161_vm6 = vweird.f32 %v1849_v62 }
 0x196   : > { %1405 = vst.msk [vmem:[%s2422_s16 + $0x78] sm:$0xff] %vm510_vm0, %v1385_v63  ;;  %v1293_v8 = vmul.f32 %v1845_v47, %v1292_v1  ;;  %v1376_v10 = vmul.f32 %v1356_v0, %v1153_v7  ;;  %v1157_v12 = vsub.f32 1.0, %v1156_v4  ;;  %1856 = vpow2.f32 %v1697_v2  ;;  %vm1162_vm9 = vmor %vm1160_vm8, %vm1161_vm6  ;;  %v1358_v4 = vld [vmem:[%s2417_s25 + $0x40] sm:$0xff] }
 0x197   : > { %v940_v14 = vpop.f32.mrf.mxu2  ;;  %v968_v17 = vadd.f32 %v967_v5, %v2408_v28  ;;  %1858 = vrcp.f32 %v2495_v13  ;;  %v1167_v31 = vor.u32 1.1754944e-38, %v1166_v16  ;;  %v1314_v36 = vand.u32 2147483647, %v2484_v60  ;;  %v1368_v16 = vld [vmem:[%s2417_s25 + $0x90] sm:$0xff] }
 0x198   : > { %v1294_v15 = vadd.f32 %v1845_v47, %v1293_v8  ;;  %1396 = vst.msk [vmem:[%s2422_s16 + $0x30] sm:$0xff] %vm510_vm0, %v1376_v10  ;;  %v1158_v19 = vmul.f32 %v1849_v62, %v1157_v12  ;;  %v941_v29 = vadd.f32 %v940_v14, %v2408_v28  ;;  %v1316_v37 = vand.u32 2147483648, %v2484_v60 }
 0x199   : > { %v1853_v22 = vpop.eup %1852  ;;  %v1707_v24 = vmul.f32 -1.442695, %v968_v17  ;;  %vm1310_vm12 = vweird.f32 %v2484_v60  ;;  %vm1315_vm13 = vcmp.eq.f32.partialorder %v1314_v36, 8.507059e+37  ;;  %v1179_v50 = vand.u32 2147483647, %v2495_v13 }
 0x19a   : > { %v1298_v23 = vsel %vm1297_vm5, %v1845_v47, %v1294_v15  ;;  %v1159_v27 = vadd.f32 %v1849_v62, %v1158_v19  ;;  %v2507_v20 = vadd.f32 1.0, %v1853_v22  ;;  %v1698_v41 = vmul.f32 -1.442695, %v941_v29 }
 0x19b   : > { %v1855_v25 = vpop.eup %1854  ;;  %v1303_v26 = vsel %vm1300_vm7, %v1302_v11, %v1298_v23  ;;  %v1317_v48 = vor.u32 1.1754944e-38, %v1316_v37  ;;  %v1181_v51 = vand.u32 2147483648, %v2495_v13  ;;  %vm1175_vm1 = vweird.f32 %v2495_v13 }
 0x19c   : > { %v1386_v30 = vmul.f32 %v1366_v18, %v1303_v26  ;;  %v1306_v32 = vmul.f32 %v1855_v25, %v2484_v60  ;;  %v1163_v34 = vsel %vm1162_vm9, %v1849_v62, %v1159_v27  ;;  %1860 = vrcp.f32 %v2507_v20  ;;  %v1857_v33 = vpop.eup %1856 }
 0x19d   : > { %v1168_v35 = vsel %vm1165_vm10, %v1167_v31, %v1163_v34  ;;  %v1859_v38 = vpop.eup %1858  ;;  %v2517_v40 = vadd.f32 1.0, %v1857_v33  ;;  %1862 = vpow2.f32 %v1707_v24  ;;  %vm1311_vm11 = vweird.f32 %v1855_v25  ;;  %v1359_v31 = vld [vmem:[%s2417_s25 + $0x48] sm:$0xff] }
 0x19e   : > { %1406 = vst.msk [vmem:[%s2422_s16 + $0x80] sm:$0xff] %vm510_vm0, %v1386_v30  ;;  %v1307_v54 = vsub.f32 1.0, %v1306_v32  ;;  %v1377_v39 = vmul.f32 %v1357_v61, %v1168_v35  ;;  %v1171_v44 = vmul.f32 %v1859_v38, %v2495_v13  ;;  %vm1312_vm14 = vmor %vm1310_vm12, %vm1311_vm11  ;;  %vm1176_vm15 = vweird.f32 %v1859_v38 }
 0x19f   : > { %v943_v42 = vpop.f32.mrf.mxu2  ;;  %1864 = vrcp.f32 %v2517_v40  ;;  %v1329_v59 = vand.u32 2147483647, %v2507_v20  ;;  %vm1177_vm2 = vmor %vm1175_vm1, %vm1176_vm15  ;;  %vm1180_vm3 = vcmp.eq.f32.partialorder %v1179_v50, 8.507059e+37  ;;  %v1182_v3 = vor.u32 1.1754944e-38, %v1181_v51 }
 0x1a0   : > { %v1308_v43 = vmul.f32 %v1855_v25, %v1307_v54  ;;  %1397 = vst.msk [vmem:[%s2422_s16 + $0x38] sm:$0xff] %vm510_vm0, %v1377_v39  ;;  %v1172_v46 = vsub.f32 1.0, %v1171_v44  ;;  %1866 = vpow2.f32 %v1698_v41  ;;  %v944_v52 = vadd.f32 %v943_v42, %v2408_v28 }
 0x1a1   : > { %v1331_v5 = vand.u32 2147483648, %v2507_v20  ;;  %vm1325_vm5 = vweird.f32 %v2507_v20  ;;  %vm1330_vm6 = vcmp.eq.f32.partialorder %v1329_v59, 8.507059e+37  ;;  %v1196_v17 = vand.u32 2147483648, %v2517_v40 }
 0x1a2   : > { %v1309_v45 = vadd.f32 %v1855_v25, %v1308_v43  ;;  %v1861_v47 = vpop.eup %1860  ;;  %v1173_v55 = vmul.f32 %v1859_v38, %v1172_v46  ;;  %v1699_v60 = vmul.f32 -1.442695, %v944_v52  ;;  %v1194_v23 = vand.u32 2147483647, %v2517_v40 }
 0x1a3   : > { %v1321_v56 = vmul.f32 %v1861_v47, %v2507_v20  ;;  %v1863_v57 = vpop.eup %1862  ;;  %vm1326_vm4 = vweird.f32 %v1861_v47  ;;  %v1332_v15 = vor.u32 1.1754944e-38, %v1331_v5  ;;  %vm1190_vm9 = vweird.f32 %v2517_v40 }
 0x1a4   : > { %v1313_v53 = vsel %vm1312_vm14, %v1855_v25, %v1309_v45  ;;  %v1174_v63 = vadd.f32 %v1859_v38, %v1173_v55  ;;  %v2531_v1 = vadd.f32 1.0, %v1863_v57  ;;  %1868 = vpow2.f32 %v1699_v60  ;;  %vm1327_vm7 = vmor %vm1325_vm5, %vm1326_vm4 }
 0x1a5   : > { %v1318_v58 = vsel %vm1315_vm13, %v1317_v48, %v1313_v53  ;;  %v1322_v0 = vsub.f32 1.0, %v1321_v56  ;;  %v1865_v2 = vpop.eup %1864  ;;  %v1197_v30 = vor.u32 1.1754944e-38, %v1196_v17  ;;  %vm1195_vm11 = vcmp.eq.f32.partialorder %v1194_v23, 8.507059e+37 }
 0x1a6   : > { %v1387_v62 = vmul.f32 %v1367_v49, %v1318_v58  ;;  %v1867_v7 = vpop.eup %1866  ;;  %v1178_v8 = vsel %vm1177_vm2, %v1859_v38, %v1174_v63  ;;  %v1186_v10 = vmul.f32 %v1865_v2, %v2517_v40  ;;  %1870 = vrcp.f32 %v2531_v1  ;;  %v1369_v49 = vld [vmem:[%s2417_s25 + $0x98] sm:$0xff] }
 0x1a7   : > { %v946_v6 = vpop.f32.mrf.mxu2  ;;  %v1323_v9 = vmul.f32 %v1861_v47, %v1322_v0  ;;  %v1183_v11 = vsel %vm1180_vm3, %v1182_v3, %v1178_v8  ;;  %v2542_v18 = vadd.f32 1.0, %v1867_v7  ;;  %vm1191_vm8 = vweird.f32 %v1865_v2 }
 0x1a8   : > { %1407 = vst.msk [vmem:[%s2422_s16 + $0x88] sm:$0xff] %vm510_vm0, %v1387_v62  ;;  %v1378_v12 = vmul.f32 %v1358_v4, %v1183_v11  ;;  %v1187_v14 = vsub.f32 1.0, %v1186_v10  ;;  %v947_v19 = vadd.f32 %v946_v6, %v2408_v28  ;;  %vm1192_vm10 = vmor %vm1190_vm9, %vm1191_vm8  ;;  %v1344_v38 = vand.u32 2147483647, %v2531_v1 }
 0x1a9   : > { %v1324_v13 = vadd.f32 %v1861_v47, %v1323_v9  ;;  %1872 = vrcp.f32 %v2542_v18  ;;  %v1346_v39 = vand.u32 2147483648, %v2531_v1  ;;  %vm1340_vm13 = vweird.f32 %v2531_v1 }
 0x1aa   : > { %1398 = vst.msk [vmem:[%s2422_s16 + $0x40] sm:$0xff] %vm510_vm0, %v1378_v12  ;;  %v1188_v22 = vmul.f32 %v1865_v2, %v1187_v14  ;;  %v1869_v24 = vpop.eup %1868  ;;  %v1700_v61 = vmul.f32 -1.442695, %v947_v19  ;;  %v1209_v46 = vand.u32 2147483647, %v2542_v18  ;;  %vm1345_vm15 = vcmp.eq.f32.partialorder %v1344_v38, 8.507059e+37 }
 0x1ab   : > { %v1328_v21 = vsel %vm1327_vm7, %v1861_v47, %v1324_v13  ;;  %v2550_v20 = vadd.f32 1.0, %v1869_v24  ;;  %v1347_v48 = vor.u32 1.1754944e-38, %v1346_v39  ;;  %v1211_v50 = vand.u32 2147483648, %v2542_v18  ;;  %v1361_v12 = vld [vmem:[%s2417_s25 + $0x58] sm:$0xff]  ;;  %v1363_v38 = vld [vmem:[%s2417_s25 + $0x68] sm:$0xff] }
 0x1ac   : > { %v1333_v25 = vsel %vm1330_vm6, %v1332_v15, %v1328_v21  ;;  %v1189_v27 = vadd.f32 %v1865_v2, %v1188_v22  ;;  %v1871_v29 = vpop.eup %1870  ;;  %vm1205_vm2 = vweird.f32 %v2542_v18  ;;  %vm1210_vm3 = vcmp.eq.f32.partialorder %v1209_v46, 8.507059e+37 }
 0x1ad   : > { %v1388_v26 = vmul.f32 %v1368_v16, %v1333_v25  ;;  %v1336_v33 = vmul.f32 %v1871_v29, %v2531_v1  ;;  %1874 = vrcp.f32 %v2550_v20  ;;  %vm1341_vm12 = vweird.f32 %v1871_v29  ;;  %v1360_v1 = vld [vmem:[%s2417_s25 + $0x50] sm:$0xff] }
 0x1ae   : > { %v1193_v34 = vsel %vm1192_vm10, %v1865_v2, %v1189_v27  ;;  %1876 = vpow2.f32 %v1700_v61  ;;  %vm1342_vm14 = vmor %vm1340_vm13, %vm1341_vm12  ;;  %v1212_v0 = vor.u32 1.1754944e-38, %v1211_v50  ;;  %v1224_v2 = vand.u32 2147483647, %v2550_v20 }
 0x1af   : > { %v949_v32 = vpop.f32.mrf.mxu2  ;;  %1408 = vst.msk [vmem:[%s2422_s16 + $0x90] sm:$0xff] %vm510_vm0, %v1388_v26  ;;  %v1198_v35 = vsel %vm1195_vm11, %v1197_v30, %v1193_v34  ;;  %v1337_v36 = vsub.f32 1.0, %v1336_v33  ;;  %v1873_v37 = vpop.eup %1872  ;;  %v1226_v3 = vand.u32 2147483648, %v2550_v20  ;;  %vm1220_vm6 = vweird.f32 %v2550_v20 }
 0x1b0   : > { %v1379_v54 = vmul.f32 %v1359_v31, %v1198_v35  ;;  %v950_v40 = vadd.f32 %v949_v32, %v2408_v28  ;;  %v1201_v42 = vmul.f32 %v1873_v37, %v2542_v18  ;;  %vm1206_vm1 = vweird.f32 %v1873_v37 }
 0x1b1   : > { %v1338_v41 = vmul.f32 %v1871_v29, %v1337_v36  ;;  %vm1207_vm4 = vmor %vm1205_vm2, %vm1206_vm1  ;;  %v1227_v11 = vor.u32 1.1754944e-38, %v1226_v3  ;;  %vm1225_vm8 = vcmp.eq.f32.partialorder %v1224_v2, 8.507059e+37 }
 0x1b2   : > { %1399 = vst.msk [vmem:[%s2422_s16 + $0x48] sm:$0xff] %vm510_vm0, %v1379_v54  ;;  %v1701_v43 = vmul.f32 -1.442695, %v950_v40  ;;  %v1202_v45 = vsub.f32 1.0, %v1201_v42 }
 0x1b3   : > { %v1339_v44 = vadd.f32 %v1871_v29, %v1338_v41  ;;  %v1875_v47 = vpop.eup %1874 }
 0x1b4   : > { %1878 = vpow2.f32 %v1701_v43  ;;  %v1877_v52 = vpop.eup %1876  ;;  %v1203_v55 = vmul.f32 %v1873_v37, %v1202_v45  ;;  %v1216_v56 = vmul.f32 %v1875_v47, %v2550_v20  ;;  %vm1221_vm5 = vweird.f32 %v1875_v47 }
 0x1b5   : > { %v1343_v53 = vsel %vm1342_vm14, %v1871_v29, %v1339_v44  ;;  %v1042_v58 = vadd.f32 1.0, %v1877_v52  ;;  %vm1222_vm7 = vmor %vm1220_vm6, %vm1221_vm5  ;;  %v1362_v29 = vld [vmem:[%s2417_s25 + $0x60] sm:$0xff] }
 0x1b6   : > { %v1348_v57 = vsel %vm1345_vm15, %v1347_v48, %v1343_v53  ;;  %v1204_v62 = vadd.f32 %v1873_v37, %v1203_v55  ;;  %v1217_v63 = vsub.f32 1.0, %v1216_v56 }
 0x1b7   : > { %v952_v51 = vpop.f32.mrf.mxu2  ;;  %v1389_v60 = vmul.f32 %v1369_v49, %v1348_v57  ;;  %1880 = vrcp.f32 %v1042_v58  ;;  %v1241_v21 = vand.u32 2147483648, %v1042_v58  ;;  %v1239_v25 = vand.u32 2147483647, %v1042_v58  ;;  %v1364_v49 = vld [vmem:[%s2417_s25 + $0x70] sm:$0xff] }
 0x1b8   : > { %v953_v59 = vadd.f32 %v952_v51, %v2408_v28  ;;  %v1208_v4 = vsel %vm1207_vm4, %v1873_v37, %v1204_v62  ;;  %v1218_v5 = vmul.f32 %v1875_v47, %v1217_v63  ;;  %vm1235_vm10 = vweird.f32 %v1042_v58 }
 0x1b9   : > { %1409 = vst.msk [vmem:[%s2422_s16 + $0x98] sm:$0xff] %vm510_vm0, %v1389_v60  ;;  %v1213_v7 = vsel %vm1210_vm3, %v1212_v0, %v1208_v4  ;;  %v1242_v20 = vor.u32 1.1754944e-38, %v1241_v21  ;;  %vm1240_vm12 = vcmp.eq.f32.partialorder %v1239_v25, 8.507059e+37 }
 0x1ba   : > { %v1702_v28 = vmul.f32 -1.442695, %v953_v59  ;;  %v1879_v6 = vpop.eup %1878  ;;  %v1380_v8 = vmul.f32 %v1360_v1, %v1213_v7  ;;  %v1219_v9 = vadd.f32 %v1875_v47, %v1218_v5 }
 0x1bb   : > { %v1043_v10 = vadd.f32 1.0, %v1879_v6 }
 0x1bc   : > { %1882 = vpow2.f32 %v1702_v28  ;;  %1400 = vst.msk [vmem:[%s2422_s16 + $0x50] sm:$0xff] %vm510_vm0, %v1380_v8  ;;  %v1223_v13 = vsel %vm1222_vm7, %v1875_v47, %v1219_v9 }
 0x1bd   : > { %1884 = vrcp.f32 %v1043_v10  ;;  %v1881_v14 = vpop.eup %1880  ;;  %v1228_v15 = vsel %vm1225_vm8, %v1227_v11, %v1223_v13  ;;  %v1256_v61 = vand.u32 2147483648, %v1043_v10  ;;  %v1254_v33 = vand.u32 2147483647, %v1043_v10 }
 0x1be   : > { %v1381_v16 = vmul.f32 %v1361_v12, %v1228_v15  ;;  %v1231_v17 = vmul.f32 %v1881_v14, %v1042_v58  ;;  %vm1236_vm9 = vweird.f32 %v1881_v14  ;;  %vm1250_vm14 = vweird.f32 %v1043_v10 }
 0x1bf   : > { %vm1237_vm11 = vmor %vm1235_vm10, %vm1236_vm9  ;;  %v1257_v37 = vor.u32 1.1754944e-38, %v1256_v61  ;;  %vm1255_vm1 = vcmp.eq.f32.partialorder %v1254_v33, 8.507059e+37 }
 0x1c0   : > { %1401 = vst.msk [vmem:[%s2422_s16 + $0x58] sm:$0xff] %vm510_vm0, %v1381_v16  ;;  %v1232_v19 = vsub.f32 1.0, %v1231_v17 }
 0x1c2   : > { %v1883_v18 = vpop.eup %1882  ;;  %v1233_v24 = vmul.f32 %v1881_v14, %v1232_v19 }
 0x1c3   : > { %v1044_v22 = vadd.f32 1.0, %v1883_v18  ;;  %v1885_v23 = vpop.eup %1884 }
 0x1c4   : > { %v1246_v26 = vmul.f32 %v1885_v23, %v1043_v10  ;;  %v1234_v27 = vadd.f32 %v1881_v14, %v1233_v24  ;;  %vm1251_vm13 = vweird.f32 %v1885_v23 }
 0x1c5   : > { %1886 = vrcp.f32 %v1044_v22  ;;  %vm1252_vm15 = vmor %vm1250_vm14, %vm1251_vm13  ;;  %v1271_v44 = vand.u32 2147483648, %v1044_v22  ;;  %v1269_v46 = vand.u32 2147483647, %v1044_v22  ;;  %vm1265_vm3 = vweird.f32 %v1044_v22 }
 0x1c6   : > { %v1247_v30 = vsub.f32 1.0, %v1246_v26  ;;  %v1238_v31 = vsel %vm1237_vm11, %v1881_v14, %v1234_v27 }
 0x1c7   : > { %v1243_v32 = vsel %vm1240_vm12, %v1242_v20, %v1238_v31  ;;  %v1272_v48 = vor.u32 1.1754944e-38, %v1271_v44  ;;  %vm1270_vm5 = vcmp.eq.f32.partialorder %v1269_v46, 8.507059e+37 }
 0x1c8   : > { %v1248_v34 = vmul.f32 %v1885_v23, %v1247_v30  ;;  %v1382_v35 = vmul.f32 %v1362_v29, %v1243_v32 }
 0x1ca   : > { %v1249_v36 = vadd.f32 %v1885_v23, %v1248_v34  ;;  %1402 = vst.msk [vmem:[%s2422_s16 + $0x60] sm:$0xff] %vm510_vm0, %v1382_v35 }
 0x1cb   : > { %v1887_v54 = vpop.eup %1886 }
 0x1cc   : > { %v1261_v39 = vmul.f32 %v1887_v54, %v1044_v22  ;;  %v1253_v40 = vsel %vm1252_vm15, %v1885_v23, %v1249_v36  ;;  %vm1266_vm2 = vweird.f32 %v1887_v54 }
 0x1cd   : > { %v1258_v41 = vsel %vm1255_vm1, %v1257_v37, %v1253_v40  ;;  %vm1267_vm4 = vmor %vm1265_vm3, %vm1266_vm2 }
 0x1ce   : > { %v1262_v42 = vsub.f32 1.0, %v1261_v39  ;;  %v1383_v43 = vmul.f32 %v1363_v38, %v1258_v41 }
 0x1d0   : > { %v1263_v45 = vmul.f32 %v1887_v54, %v1262_v42  ;;  %1403 = vst.msk [vmem:[%s2422_s16 + $0x68] sm:$0xff] %vm510_vm0, %v1383_v43 }
 0x1d2   : > { %v1264_v47 = vadd.f32 %v1887_v54, %v1263_v45 }
 0x1d4   : > { %v1268_v50 = vsel %vm1267_vm4, %v1887_v54, %v1264_v47 }
 0x1d5   : > { %v1273_v51 = vsel %vm1270_vm5, %v1272_v48, %v1268_v50 }
 0x1d6   : > { %v1384_v52 = vmul.f32 %v1364_v49, %v1273_v51 }
 0x1d8   : > { %1404 = vst.msk [vmem:[%s2422_s16 + $0x70] sm:$0xff] %vm510_vm0, %v1384_v52 }
 0x1d9   : > { %2005 = shalt.err (!%p2002_p13)
}
 0x1da   : > { %s2068_s1 = smov 128   ;;  %s2069_s8 = smov 8  }
 0x1db   : > { %1738 = dma.vmem_to_hbm [thread:$0]  (%p2173_p9), %s1426_s15, 2560, %s1428_s3, %s1411_s6, %s2068_s1, %s2068_s1, %s2069_s8  }
 0x1dc PF: > { %s2678_s24 = sld [smem:[#allocation13_spill]]  ;;  %p1751_p0 = pnand %p1583_p12, %p2180_p11 }
 0x1dd   : > { %s2680_s25 = sld [smem:[#allocation16_spill]] }
 0x1de   : > { %p1752_p1 = pneg %p1751_p0 }
 0x1e2   : > { %s1442_s16 = sand.u32 1, %s2678_s24  }
 0x1e3   : > { %s1443_s27 = scalar_lea.sflag [#allocation5], %s1442_s16 }
 0x1e4   : > { %2039 = dma.done.wait (%p1752_p1), %s1443_s27, 2560  }
 0x1e5   : > { %2041 = vsyncadd (%p1752_p1), %s1443_s27, 4294964736  ;;  %s28_s12 = sadd.s32 1, %s2680_s25   ;;  %s2681_s28 = sld [smem:[#allocation14_spill]] }
 0x1e6   : > { %p25_p2 = scmp.ge.s32.totalorder %s28_s12, 4   ;;  %s2682_s9 = sld [smem:[#allocation19_spill]] }
 0x1e7   : > { %s2683_s13 = sld [smem:[#allocation17_spill]]  ;;  %s2684_s29 = smov %s2048_s30 }
 0x1e8   : > { %s2686_s10 = smov %s2060_s11 }
 0x1e9   :  { %27 = sbr.rel (!%p25_p2) target bundleno = 14 (0xe), region = 126 }
 0x1eb   : > { %s2685_s30 = smov %s2681_s28 }
 0x1ed   : > { %s2687_s11 = smov %s2683_s13 }
 0x1ee   :  { %1449 = vsyncpa [#allocation4], 1 }
 0x1ef   :  { %1451 = vsyncpa [#allocation4 + $0x1], 1 }
 0x1f0   :  { %1452 = vsyncpa [#allocation7], 1 }
 0x1f1   :  { %1454 = vsyncpa [#allocation7 + $0x1], 1 }
 0x1f2   :  { %1455 = vsyncpa [#allocation5], 1 }
 0x1f3   :  { %1457 = vsyncpa [#allocation5 + $0x1], 1 }

</bundles_post_ra>
